<compile_context>
chip_gen: v7x
topology: tpu7x:2x2x1
jax: 0.10.0
libtpu: 0.0.40
codegen_flags: <defaults>
</compile_context>

<pallas_src>
import jax
import jax.numpy as jnp
from jax.experimental import pallas as pl
from jax.experimental.pallas import tpu as pltpu

# ---- model hyperparameters (small, consistent with the module's forward) ----
KERNEL_LIST = (3, 4, 5)
TRAIN_MAX_SENTENCE_LEN = 16      # L
VOCAB_SIZE = 50                  # V
EMBEDDING_DIM = 32               # E
FILTER_NUM = 16                  # F
OUTPUT_SIZE = 4                  # O
BATCH = 2                        # B
LEAKY_SLOPE = 0.01               # nn.LeakyReLU default negative_slope
# TODO(synk): nn.Dropout(p=0.5) in training mode is stochastic; implemented as identity (eval).

V, E, F, O, L = VOCAB_SIZE, EMBEDDING_DIM, FILTER_NUM, OUTPUT_SIZE, TRAIN_MAX_SENTENCE_LEN
KF = sum(KERNEL_LIST) * F                 # 192 packed conv columns (tap-major per kernel)
FEAT = len(KERNEL_LIST) * F               # 48 pooled features (torch.cat order)


def _round_up(x, m):
    return (x + m - 1) // m * m


# ---- layout of the single packed parameter slab (rows padded to multiples of 8) ----
V_PAD = _round_up(V, 8)                   # 56 (pad rows are zero; never selected by one-hot)
ROW_TABLE = 0                             # rows [0, 56)   cols [0, E)    : embedding table
ROW_WALL = ROW_TABLE + V_PAD              # rows [56, 88)  cols [0, 192)  : packed conv weight
ROW_BIAS = ROW_WALL + E                   # row  88        cols [0, 48)   : conv biases [b3|b4|b5]
ROW_FCW = ROW_BIAS + 8                    # rows [96, 144) cols [0, O)    : fc weight (48, 4)
ROW_FCB = ROW_FCW + FEAT                  # row  144       cols [0, O)    : fc bias
SLAB_ROWS = ROW_FCB + 8                   # 152
SLAB_COLS = KF                            # 192


def make_textcnn_kernel(B, Lseq):
    """Fused TextCNN kernel. Refs: ids (B*L, 1) int32, slab (152, 192) f32, out (B, O)."""
    BL = B * Lseq

    def kernel(ids_ref, slab_ref, out_ref):
        # ---- fused embedding lookup: one-hot matmul (exact row selection) ----
        ids = ids_ref[...]                                               # (BL, 1) int32
        vocab_iota = jax.lax.broadcasted_iota(jnp.int32, (BL, V_PAD), 1)
        onehot = (vocab_iota == ids).astype(jnp.float32)                 # (BL, V_PAD)
        table = slab_ref[ROW_TABLE:ROW_TABLE + V_PAD, 0:E]               # (V_PAD, E)
        emb = jnp.dot(onehot, table, preferred_element_type=jnp.float32)  # (BL, E)

        # ---- ALL conv taps in one MXU push: (BL, E) x (E, 192) ----
        w_all = slab_ref[ROW_WALL:ROW_WALL + E, 0:KF]                    # (E, 192)
        y = jnp.dot(emb, w_all, preferred_element_type=jnp.float32)      # (BL, 192)
        y = y.reshape(B, Lseq, KF)                                       # (B, L, 192)

        bias_all = slab_ref[ROW_BIAS:ROW_BIAS + 1, 0:FEAT]               # (1, 48)
        logits = slab_ref[ROW_FCB:ROW_FCB + 1, 0:O]                      # (1, O) fc bias

        col = 0
        for k_idx, k in enumerate(KERNEL_LIST):
            T = Lseq - k + 1
            # Conv2d(1, F, (k, E)): shifted-slice accumulation of the big matmul (VPU work)
            acc = y[:, 0:T, col:col + F]                                 # tap 0
            for i in range(1, k):
                acc = acc + y[:, i:i + T, col + i * F:col + (i + 1) * F]
            col += k * F
            b_k = bias_all[:, k_idx * F:(k_idx + 1) * F]                 # (1, F)
            acc = acc + b_k[None, :, :]
            # LeakyReLU
            acc = jnp.where(acc > 0, acc, LEAKY_SLOPE * acc)
            # MaxPool2d((L - k + 1, 1)) -> max over T
            pooled = jnp.max(acc, axis=1)                                # (B, F)
            # Partial FC (avoids lane concat); ordering matches torch.cat(dim=1)
            fcw_k = slab_ref[ROW_FCW + k_idx * F:ROW_FCW + (k_idx + 1) * F, 0:O]   # (F, O)
            logits = logits + jnp.dot(pooled, fcw_k,
                                      preferred_element_type=jnp.float32)

        out_ref[...] = logits.astype(out_ref.dtype)

    return kernel


@jax.jit
def textcnn_forward(token_ids, slab):
    """Full TextCNN forward. token_ids: (B, L) int32; slab: packed params."""
    B, Lseq = token_ids.shape
    ids = token_ids.reshape(B * Lseq, 1).astype(jnp.int32)   # row-major: batch-major rows
    vmem = pltpu.MemorySpace.VMEM
    return pl.pallas_call(
        make_textcnn_kernel(B, Lseq),
        out_shape=jax.ShapeDtypeStruct((B, OUTPUT_SIZE), jnp.float32),
        in_specs=[pl.BlockSpec(memory_space=vmem),
                  pl.BlockSpec(memory_space=vmem)],
        out_specs=pl.BlockSpec(memory_space=vmem),
    )(ids, slab)


def init_params(key):
    """Deterministic parameter initialization (shapes match the nn.Module)."""
    keys = jax.random.split(key, 3 + 2 * len(KERNEL_LIST))
    params = {}
    params["embedding"] = jax.random.normal(keys[0], (V, E), dtype=jnp.float32) * 0.1
    ki = 1
    for k in KERNEL_LIST:
        # PyTorch conv weight is (F, 1, k, E); stored as (k, E, F) for per-tap matmul packing.
        params["conv_w_%d" % k] = jax.random.normal(keys[ki], (k, E, F), dtype=jnp.float32) * 0.05
        params["conv_b_%d" % k] = jax.random.normal(keys[ki + 1], (1, F), dtype=jnp.float32) * 0.05
        ki += 2
    # PyTorch Linear weight is (O, 3F); stored pre-transposed (3F, O).
    params["fc_w"] = jax.random.normal(keys[ki], (FEAT, O), dtype=jnp.float32) * 0.05
    params["fc_b"] = jax.random.normal(keys[ki + 1], (1, O), dtype=jnp.float32) * 0.05
    return params


def pack_params(params):
    """One-time host-side packing of every parameter into a single (152, 192) slab."""
    slab = jnp.zeros((SLAB_ROWS, SLAB_COLS), jnp.float32)
    slab = slab.at[ROW_TABLE:ROW_TABLE + V, 0:E].set(params["embedding"])
    w_cols = []
    for k in KERNEL_LIST:
        w = params["conv_w_%d" % k]                       # (k, E, F)
        w_cols.append(jnp.transpose(w, (1, 0, 2)).reshape(E, k * F))   # tap-major columns
    w_all = jnp.concatenate(w_cols, axis=1)               # (E, 192)
    slab = slab.at[ROW_WALL:ROW_WALL + E, 0:KF].set(w_all)
    bias_all = jnp.concatenate([params["conv_b_%d" % k] for k in KERNEL_LIST], axis=1)  # (1, 48)
    slab = slab.at[ROW_BIAS, 0:FEAT].set(bias_all[0])
    slab = slab.at[ROW_FCW:ROW_FCW + FEAT, 0:O].set(params["fc_w"])
    slab = slab.at[ROW_FCB, 0:O].set(params["fc_b"][0])
    return slab


def reference_forward(token_ids, params):
    """Pure-JAX reference with the original op-by-op structure (for correctness check)."""
    B, Lseq = token_ids.shape
    emb = jnp.take(params["embedding"], token_ids, axis=0)             # (B, L, E)
    feats = []
    for k in KERNEL_LIST:
        w = params["conv_w_%d" % k]
        b = params["conv_b_%d" % k]
        T = Lseq - k + 1
        acc = jnp.zeros((B, T, F), jnp.float32)
        for i in range(k):
            acc = acc + jnp.einsum("bte,ef->btf", emb[:, i:i + T, :], w[i])
        acc = acc + b[None, :, :]
        acc = jnp.where(acc > 0, acc, LEAKY_SLOPE * acc)
        feats.append(jnp.max(acc, axis=1))
    feat = jnp.concatenate(feats, axis=-1)
    return feat @ params["fc_w"] + params["fc_b"]


if __name__ == "__main__":
    root = jax.random.PRNGKey(0)
    k_params, k_tokens = jax.random.split(root)

    params = init_params(k_params)
    slab = jax.block_until_ready(pack_params(params))      # packed once, reused every call
    token_ids = jax.random.randint(
        k_tokens, (BATCH, TRAIN_MAX_SENTENCE_LEN), 0, VOCAB_SIZE, dtype=jnp.int32)

    logits = jax.block_until_ready(textcnn_forward(token_ids, slab))

    assert logits.shape == (BATCH, OUTPUT_SIZE)
    assert logits.dtype == jnp.float32
    assert bool(jnp.all(jnp.isfinite(logits)))

    ref = reference_forward(token_ids, params)
    assert bool(jnp.allclose(logits, ref, rtol=2e-3, atol=2e-3)), (logits, ref)

    print("KERNEL_OK")
</pallas_src>

<mosaic_0001>
module attributes {stable_mosaic.version = 11 : i64} {
  func.func @kernel(%arg0: memref<32x1xi32, #tpu.memory_space<vmem>>, %arg1: memref<152x192xf32, #tpu.memory_space<vmem>>, %arg2: memref<2x4xf32, #tpu.memory_space<vmem>>) attributes {dimension_semantics = [], scalar_prefetch = 0 : i64, scratch_operands = 0 : i64, tpu.core_type = #tpu.core_type<tc>} {
    %c0 = arith.constant 0 : index
    %c0_0 = arith.constant 0 : index
    %0 = vector.load %arg0[%c0, %c0_0] : memref<32x1xi32, #tpu.memory_space<vmem>>, vector<32x1xi32>
    %1 = tpu.iota {dimensions = array<i32: 1>} : vector<32x56xi32>
    %2 = vector.broadcast %0 : vector<32x1xi32> to vector<32x56xi32>
    %3 = arith.cmpi eq, %1, %2 : vector<32x56xi32>
    %4 = arith.extui %3 : vector<32x56xi1> to vector<32x56xi32>
    %5 = arith.sitofp %4 : vector<32x56xi32> to vector<32x56xf32>
    %c0_1 = arith.constant 0 : index
    %c0_2 = arith.constant 0 : index
    %6 = vector.load %arg1[%c0_1, %c0_2] : memref<152x192xf32, #tpu.memory_space<vmem>>, vector<56x32xf32>
    %cst = arith.constant dense<0.000000e+00> : vector<32x32xf32>
    %7 = tpu.matmul %5, %6, %cst {dimension_numbers = #tpu.dot_dimension_numbers<[1], [0], [0], [1], [0, 0, 1, 1], [], []>} : vector<32x56xf32>, vector<56x32xf32>, vector<32x32xf32> -> vector<32x32xf32>
    %c56 = arith.constant 56 : index
    %c0_3 = arith.constant 0 : index
    %8 = vector.load %arg1[%c56, %c0_3] : memref<152x192xf32, #tpu.memory_space<vmem>>, vector<32x192xf32>
    %cst_4 = arith.constant dense<0.000000e+00> : vector<32x192xf32>
    %9 = tpu.matmul %7, %8, %cst_4 {dimension_numbers = #tpu.dot_dimension_numbers<[1], [0], [0], [1], [0, 0, 1, 1], [], []>} : vector<32x32xf32>, vector<32x192xf32>, vector<32x192xf32> -> vector<32x192xf32>
    %10 = vector.shape_cast %9 : vector<32x192xf32> to vector<2x16x192xf32>
    %c88 = arith.constant 88 : index
    %c0_5 = arith.constant 0 : index
    %11 = vector.load %arg1[%c88, %c0_5] : memref<152x192xf32, #tpu.memory_space<vmem>>, vector<1x48xf32>
    %c144 = arith.constant 144 : index
    %c0_6 = arith.constant 0 : index
    %12 = vector.load %arg1[%c144, %c0_6] : memref<152x192xf32, #tpu.memory_space<vmem>>, vector<1x4xf32>
    %13 = vector.extract_strided_slice %10 {offsets = [0, 0, 0], sizes = [2, 14, 16], strides = [1, 1, 1]} : vector<2x16x192xf32> to vector<2x14x16xf32>
    %14 = vector.extract_strided_slice %10 {offsets = [0, 1, 16], sizes = [2, 14, 16], strides = [1, 1, 1]} : vector<2x16x192xf32> to vector<2x14x16xf32>
    %15 = arith.addf %13, %14 : vector<2x14x16xf32>
    %16 = vector.extract_strided_slice %10 {offsets = [0, 2, 32], sizes = [2, 14, 16], strides = [1, 1, 1]} : vector<2x16x192xf32> to vector<2x14x16xf32>
    %17 = arith.addf %15, %16 : vector<2x14x16xf32>
    %18 = vector.extract_strided_slice %11 {offsets = [0, 0], sizes = [1, 16], strides = [1, 1]} : vector<1x48xf32> to vector<1x16xf32>
    %19 = vector.shape_cast %18 : vector<1x16xf32> to vector<1x1x16xf32>
    %20 = vector.broadcast %19 : vector<1x1x16xf32> to vector<2x14x16xf32>
    %21 = arith.addf %17, %20 : vector<2x14x16xf32>
    %cst_7 = arith.constant 0.000000e+00 : f32
    %22 = vector.broadcast %cst_7 : f32 to vector<2x14x16xf32>
    %23 = arith.cmpf ogt, %21, %22 : vector<2x14x16xf32>
    %cst_8 = arith.constant 0.00999999977 : f32
    %24 = vector.broadcast %cst_8 : f32 to vector<2x14x16xf32>
    %25 = arith.mulf %24, %21 : vector<2x14x16xf32>
    %26 = arith.select %23, %21, %25 : vector<2x14x16xi1>, vector<2x14x16xf32>
    %cst_9 = arith.constant dense<0xFF800000> : vector<2x16xf32>
    %27 = vector.multi_reduction <maximumf>, %26, %cst_9 [1] : vector<2x14x16xf32> to vector<2x16xf32>
    %c96 = arith.constant 96 : index
    %c0_10 = arith.constant 0 : index
    %28 = vector.load %arg1[%c96, %c0_10] : memref<152x192xf32, #tpu.memory_space<vmem>>, vector<16x4xf32>
    %cst_11 = arith.constant dense<0.000000e+00> : vector<2x4xf32>
    %29 = tpu.matmul %27, %28, %cst_11 {dimension_numbers = #tpu.dot_dimension_numbers<[1], [0], [0], [1], [0, 0, 1, 1], [], []>} : vector<2x16xf32>, vector<16x4xf32>, vector<2x4xf32> -> vector<2x4xf32>
    %30 = vector.broadcast %12 : vector<1x4xf32> to vector<2x4xf32>
    %31 = arith.addf %30, %29 : vector<2x4xf32>
    %32 = vector.extract_strided_slice %10 {offsets = [0, 0, 48], sizes = [2, 13, 16], strides = [1, 1, 1]} : vector<2x16x192xf32> to vector<2x13x16xf32>
    %33 = vector.extract_strided_slice %10 {offsets = [0, 1, 64], sizes = [2, 13, 16], strides = [1, 1, 1]} : vector<2x16x192xf32> to vector<2x13x16xf32>
    %34 = arith.addf %32, %33 : vector<2x13x16xf32>
    %35 = vector.extract_strided_slice %10 {offsets = [0, 2, 80], sizes = [2, 13, 16], strides = [1, 1, 1]} : vector<2x16x192xf32> to vector<2x13x16xf32>
    %36 = arith.addf %34, %35 : vector<2x13x16xf32>
    %37 = vector.extract_strided_slice %10 {offsets = [0, 3, 96], sizes = [2, 13, 16], strides = [1, 1, 1]} : vector<2x16x192xf32> to vector<2x13x16xf32>
    %38 = arith.addf %36, %37 : vector<2x13x16xf32>
    %39 = vector.extract_strided_slice %11 {offsets = [0, 16], sizes = [1, 16], strides = [1, 1]} : vector<1x48xf32> to vector<1x16xf32>
    %40 = vector.shape_cast %39 : vector<1x16xf32> to vector<1x1x16xf32>
    %41 = vector.broadcast %40 : vector<1x1x16xf32> to vector<2x13x16xf32>
    %42 = arith.addf %38, %41 : vector<2x13x16xf32>
    %cst_12 = arith.constant 0.000000e+00 : f32
    %43 = vector.broadcast %cst_12 : f32 to vector<2x13x16xf32>
    %44 = arith.cmpf ogt, %42, %43 : vector<2x13x16xf32>
    %cst_13 = arith.constant 0.00999999977 : f32
    %45 = vector.broadcast %cst_13 : f32 to vector<2x13x16xf32>
    %46 = arith.mulf %45, %42 : vector<2x13x16xf32>
    %47 = arith.select %44, %42, %46 : vector<2x13x16xi1>, vector<2x13x16xf32>
    %cst_14 = arith.constant dense<0xFF800000> : vector<2x16xf32>
    %48 = vector.multi_reduction <maximumf>, %47, %cst_14 [1] : vector<2x13x16xf32> to vector<2x16xf32>
    %c112 = arith.constant 112 : index
    %c0_15 = arith.constant 0 : index
    %49 = vector.load %arg1[%c112, %c0_15] : memref<152x192xf32, #tpu.memory_space<vmem>>, vector<16x4xf32>
    %cst_16 = arith.constant dense<0.000000e+00> : vector<2x4xf32>
    %50 = tpu.matmul %48, %49, %cst_16 {dimension_numbers = #tpu.dot_dimension_numbers<[1], [0], [0], [1], [0, 0, 1, 1], [], []>} : vector<2x16xf32>, vector<16x4xf32>, vector<2x4xf32> -> vector<2x4xf32>
    %51 = arith.addf %31, %50 : vector<2x4xf32>
    %52 = vector.extract_strided_slice %10 {offsets = [0, 0, 112], sizes = [2, 12, 16], strides = [1, 1, 1]} : vector<2x16x192xf32> to vector<2x12x16xf32>
    %53 = vector.extract_strided_slice %10 {offsets = [0, 1, 128], sizes = [2, 12, 16], strides = [1, 1, 1]} : vector<2x16x192xf32> to vector<2x12x16xf32>
    %54 = arith.addf %52, %53 : vector<2x12x16xf32>
    %55 = vector.extract_strided_slice %10 {offsets = [0, 2, 144], sizes = [2, 12, 16], strides = [1, 1, 1]} : vector<2x16x192xf32> to vector<2x12x16xf32>
    %56 = arith.addf %54, %55 : vector<2x12x16xf32>
    %57 = vector.extract_strided_slice %10 {offsets = [0, 3, 160], sizes = [2, 12, 16], strides = [1, 1, 1]} : vector<2x16x192xf32> to vector<2x12x16xf32>
    %58 = arith.addf %56, %57 : vector<2x12x16xf32>
    %59 = vector.extract_strided_slice %10 {offsets = [0, 4, 176], sizes = [2, 12, 16], strides = [1, 1, 1]} : vector<2x16x192xf32> to vector<2x12x16xf32>
    %60 = arith.addf %58, %59 : vector<2x12x16xf32>
    %61 = vector.extract_strided_slice %11 {offsets = [0, 32], sizes = [1, 16], strides = [1, 1]} : vector<1x48xf32> to vector<1x16xf32>
    %62 = vector.shape_cast %61 : vector<1x16xf32> to vector<1x1x16xf32>
    %63 = vector.broadcast %62 : vector<1x1x16xf32> to vector<2x12x16xf32>
    %64 = arith.addf %60, %63 : vector<2x12x16xf32>
    %cst_17 = arith.constant 0.000000e+00 : f32
    %65 = vector.broadcast %cst_17 : f32 to vector<2x12x16xf32>
    %66 = arith.cmpf ogt, %64, %65 : vector<2x12x16xf32>
    %cst_18 = arith.constant 0.00999999977 : f32
    %67 = vector.broadcast %cst_18 : f32 to vector<2x12x16xf32>
    %68 = arith.mulf %67, %64 : vector<2x12x16xf32>
    %69 = arith.select %66, %64, %68 : vector<2x12x16xi1>, vector<2x12x16xf32>
    %cst_19 = arith.constant dense<0xFF800000> : vector<2x16xf32>
    %70 = vector.multi_reduction <maximumf>, %69, %cst_19 [1] : vector<2x12x16xf32> to vector<2x16xf32>
    %c128 = arith.constant 128 : index
    %c0_20 = arith.constant 0 : index
    %71 = vector.load %arg1[%c128, %c0_20] : memref<152x192xf32, #tpu.memory_space<vmem>>, vector<16x4xf32>
    %cst_21 = arith.constant dense<0.000000e+00> : vector<2x4xf32>
    %72 = tpu.matmul %70, %71, %cst_21 {dimension_numbers = #tpu.dot_dimension_numbers<[1], [0], [0], [1], [0, 0, 1, 1], [], []>} : vector<2x16xf32>, vector<16x4xf32>, vector<2x4xf32> -> vector<2x4xf32>
    %73 = arith.addf %51, %72 : vector<2x4xf32>
    %c0_22 = arith.constant 0 : index
    %c0_23 = arith.constant 0 : index
    %74 = vector.load %arg2[%c0_22, %c0_23] : memref<2x4xf32, #tpu.memory_space<vmem>>, vector<2x4xf32>
    tpu.vector_store %arg2[%c0_22, %c0_23], %73 {strides = array<i32>} : memref<2x4xf32, #tpu.memory_space<vmem>>, vector<2x4xf32>,
    return
  }
}

</mosaic_0001>

<bundles_post_ra>
// kernel: textcnn_forward.1
= control target key start
LH: loop header
LB: loop body
LE: loop exit
PB: predicated region body
PF: predicated region fallthrough
CT: control target
= control target key end

     0   :  { %7 = vsyncpa [#allocation3], 0  ;;  %s1186_s0 = inlined_call_operand.vmem [shape: s32[32,1], index: 0, kind: input, shape index: {}]   ;;  %s1187_s1 = inlined_call_operand.hbm [shape: f32[152,192], index: 1, kind: input, shape index: {}]   ;;  %s1188_s2 = inlined_call_operand.hbm [shape: f32[2,4], index: 2, kind: output, shape index: {}]  }
   0x1   :  { %8 = vsyncpa [#allocation4], 0  ;;  %s982_s9 = smov [#allocation2]   ;;  %s934_s13 = scalar_lea.hbm %s1187_s1, 4864 }
   0x2   :  { %s16_s10 = sshll.u32 %s982_s9, 4  ;;  %p935_p0 = scmp.ne.s32.totalorder %s1187_s1, %s934_s13  ;;  %s17_s10 = int_to_ptr.vmem [resolvable:$true] %s16_s10 }
   0x3   :  { %p938_p1 = scmp.lt.u32.totalorder %s934_s13, %s1187_s1 }
   0x5   :  { %p940_p2 = pnand %p938_p1, %p935_p0 }
   0x7   :  { %943 = shalt.err (!%p940_p2)
}
   0x8   :  { %s944_s18 = scalar_lea.vmem %s17_s10, 4864  ;;  %p949_p4 = scmp.lt.s32.totalorder %s17_s10, %s17_s10 }
   0x9   :  { %p945_p3 = scmp.ne.s32.totalorder %s17_s10, %s944_s18  ;;  %p950_p5 = scmp.lt.s32.totalorder %s944_s18, %s944_s18 }
   0xb   :  { %p951_p6 = por %p950_p5, %p949_p4 }
   0xd   :  { %p952_p7 = pnand %p951_p6, %p945_p3 }
   0xf   :  { %955 = shalt.err (!%p952_p7)
}
  0x10   :  { %s983_s19 = smov 256   ;;  %s984_s20 = smov 16  }
  0x11   :  { %22 = dma.hbm_to_vmem [thread:$0]  %s1187_s1, 4864, %s17_s10, [#allocation3], %s983_s19, %s983_s19, %s984_s20  }
  0x12   :  { %978 = dma.done.wait [#allocation3], 4864  }
  0x13   :  { %979 = vsyncadd [#allocation3], 4294962432  ;;  %v985_v0 = vmov 0   ;;  %v26_v1 = vld [vmem:[%s1186_s0] sm:$0xff]  ;;  %v28_v2 = vld [vmem:[%s1186_s0 + $0x10] sm:$0xff]  ;;  %v986_v10 = vmov 0.0   ;;  %v30_v28 = vlaneseq }
  0x14   :  { %932 = vset.pattern.permute.xlu0 %v985_v0  ;;  %933 = vset.pattern.permute.xlu1 %v985_v0  ;;  %v27_v3 = vld [vmem:[%s1186_s0 + $0x8] sm:$0xff]  ;;  %v56_v4 = vld [vmem:[#allocation2] sm:$0xff]  ;;  %v57_v5 = vld [vmem:[#allocation2 + $0x10] sm:$0xff]  ;;  %vm63_vm0 = vcmask 457728   ;;  %vm169_vm5 = vcmask 261120   ;;  %vm277_vm6 = vcmask 1046528  }
  0x15   :  { %33 = vperm.xlu0 %932, %v26_v1   ;;  %39 = vperm.xlu1 %933, %v28_v2   ;;  %v29_v6 = vld [vmem:[%s1186_s0 + $0x18] sm:$0xff]  ;;  %v886_v7 = vpack.c.bf16 %v57_v5, %v56_v4  ;;  %v58_v8 = vld [vmem:[#allocation2 + $0x20] sm:$0xff]  ;;  %v59_v9 = vld [vmem:[#allocation2 + $0x30] sm:$0xff]  ;;  %v31_v29 = vand.u32 127, %v30_v28  ;;  %s987_s0 = smov 32   ;;  %vm300_vm7 = vcmask 1045504  }
  0x16   :  { %246 = vmatprep.mubr.f32.mxu1 %v986_v10  ;;  %v890_v11 = vpack.c.bf16 %v59_v9, %v58_v8  ;;  %v60_v12 = vld [vmem:[#allocation2 + $0x40] sm:$0xff]  ;;  %v61_v13 = vld [vmem:[#allocation2 + $0x50] sm:$0xff]  ;;  %v162_v16 = vld [vmem:[#allocation2 + $0x78] sm:$0xff]  ;;  %vm438_vm8 = vcmask 1044480   ;;  %vm651_vm9 = vcmask 1043456   ;;  %s988_s30 = smov 112  }
  0x17   :  { %887 = vmatprep.subr.bf16.mxu0 %v886_v7  ;;  %v894_v14 = vpack.c.bf16 %v61_v13, %v60_v12  ;;  %v62_v15 = vld [vmem:[#allocation2 + $0x60] sm:$0xff]  ;;  %v164_v17 = vld [vmem:[#allocation2 + $0x88] sm:$0xff]  ;;  %v161_v18 = vld [vmem:[#allocation2 + $0x70] sm:$0xff]  ;;  %s989_s3 = smov 96   ;;  %s990_s4 = smov 80   ;;  %vm993_vm10 = vmmov 0  }
  0x18   :  { %889 = vmatpush3.bf16.msra.mxu0 %v886_v7  ;;  %v898_v19 = vpack.c.bf16 %v164_v17, %v162_v16  ;;  %v163_v20 = vld [vmem:[#allocation2 + $0x80] sm:$0xff]  ;;  %v166_v21 = vld [vmem:[#allocation2 + $0x98] sm:$0xff]  ;;  %v168_v22 = vld [vmem:[#allocation2 + $0xa8] sm:$0xff]  ;;  %s991_s5 = smov 64   ;;  %vm341_vm11 = vcmask 128000   ;;  %vm339_vm13 = vcmask 130048  }
  0x19   :  { %36 = vperm.xlu0 %932, %v27_v3   ;;  %42 = vperm.xlu1 %933, %v29_v6   ;;  %v900_v23 = vpack.c.bf16 %v163_v20, %v161_v18  ;;  %v902_v24 = vpack.c.bf16 %v168_v22, %v166_v21  ;;  %v165_v25 = vld [vmem:[#allocation2 + $0x90] sm:$0xff]  ;;  %v167_v26 = vld [vmem:[#allocation2 + $0xa0] sm:$0xff]  ;;  %vm483_vm15 = vcmask 520576   ;;  %s994_s6 = smov [#allocation5]  }
  0x1a   :  { %891 = vmatprep.subr.bf16.mxu0 %v890_v11  ;;  %899 = vmatprep.subr.bf16.mxu1 %v898_v19  ;;  %v904_v27 = vpack.c.bf16 %v167_v26, %v165_v25  ;;  %v1043_v42 = vld [vmem:[#allocation2 + $0xb0] ss:$0 sm:$0xff]  ;;  %s801_s7 = sshll.u32 %s994_s6, 4  ;;  %s802_s7 = int_to_ptr.vmem [resolvable:$true] %s801_s7 }
  0x1b   :  { %901 = vmatpush1.bf16.msra.mxu1 %v900_v23  ;;  %s956_s8 = scalar_lea.vmem %s802_s7, 32  ;;  %p961_p9 = scmp.lt.s32.totalorder %s802_s7, %s802_s7 }
  0x1c   :  { %893 = vmatpush3.bf16.msra.mxu0 %v890_v11  ;;  %903 = vmatprep.subr.bf16.mxu1 %v902_v24  ;;  %p957_p8 = scmp.ne.s32.totalorder %s802_s7, %s956_s8  ;;  %p962_p10 = scmp.lt.s32.totalorder %s956_s8, %s956_s8 }
  0x1d   :  { %895 = vmatprep.subr.bf16.mxu0 %v894_v14  ;;  %462 = vrot.lane.b32.xlu0 %v1043_v42, %s987_s0 }
  0x1e   :  { %p963_p11 = por %p962_p10, %p961_p9 }
  0x1f   :  { %905 = vmatpush1.bf16.msra.mxu1 %v904_v27 }
  0x20   :  { %897 = vmatpush3.bf16.msra.mxu0 %v894_v14  ;;  %p964_p12 = pnand %p963_p11, %p957_p8 }
  0x21   :  { %857 = vmatprep.subr.mxu0 %v62_v15 }
  0x24   :  { %858 = vmatpush3.msra.mxu0 %v62_v15 }
  0x94   :  { %v34_v30 = vpop.permute.xlu0 %33  ;;  %v40_v31 = vpop.permute.xlu1 %39 }
  0x95   :  { %vm44_vm1 = vcmp.eq.s32.totalorder %v31_v29, %v34_v30  ;;  %vm46_vm2 = vcmp.eq.s32.totalorder %v31_v29, %v40_v31  ;;  %v359_v30 = vld [vmem:[#allocation2 + $0xc0] sm:$0xff]  ;;  %v360_v31 = vld [vmem:[#allocation2 + $0xd0] sm:$0xff] }
  0x96   :  { %v810_v32 = vsel %vm44_vm1, 1.0, %v986_v10  ;;  %v812_v35 = vsel %vm46_vm2, 1.0, %v986_v10  ;;  %vm481_vm1 = vcmask 523648  }
  0x97   :  { %859 = vmatprep.mubr.msk.f32.mxu0 %vm63_vm0, %v810_v32  ;;  %v907_v32 = vpack.c.bf16 %v360_v31, %v359_v30 }
  0x98   :  { %v37_v33 = vpop.permute.xlu0 %36  ;;  %v43_v34 = vpop.permute.xlu1 %42 }
  0x99   :  { %vm45_vm3 = vcmp.eq.s32.totalorder %v31_v29, %v37_v33  ;;  %vm47_vm4 = vcmp.eq.s32.totalorder %v31_v29, %v43_v34  ;;  %v992_v33 = vmov 0.0|0.0   ;;  %v501_v34 = vld [vmem:[#allocation2 + $0xe0] sm:$0xff] }
  0x9a   :  { %v811_v36 = vsel %vm45_vm3, 1.0, %v986_v10  ;;  %v813_v37 = vsel %vm47_vm4, 1.0, %v986_v10  ;;  %906 = vmatprep.subr.bf16.mxu1 %v992_v33  ;;  %909 = vmatprep.subr.bf16.mxu0 %v992_v33 }
  0x9b   :  { %860 = vmatmul.mubr.msk.f32.vlgmr.msra.gmra.mrb[0].mxu0 %vm63_vm0, %v811_v36 }
  0x9c   :  { %862 = vmatprep.mubr.msk.f32.mxu0 %vm63_vm0, %v812_v35  ;;  %v502_v35 = vld [vmem:[#allocation2 + $0xf0] sm:$0xff] }
  0x9d   :  { %v910_v36 = vpack.c.bf16 %v502_v35, %v501_v34 }
  0x9f   :  { %863 = vmatmul.mubr.msk.f32.gmra.mrb[2].mxu0 %vm63_vm0, %v813_v37  ;;  %v1110_v37 = vpop.permute.xlu0 %462 }
  0xa0   :  { %876 = vmatprep.mubr.msk.f32.mxu0 %vm993_vm10, %v986_v10  ;;  %911 = vmatpush3.bf16.msra.mxu0 %v910_v36 }
  0xa1   :  { %912 = vmatprep.subr.bf16.mxu0 %v992_v33 }
 0x16e   :  { %v861_v38 = vpop.f32.mrb[0].mxu0 }
 0x16f   :  { %v142_v39 = vpop.f32.mrb[1].mxu0 }
 0x170   :  { %818 = vmatmul.mubr.msk.f32.vlgmr.msra.gmra.mrb[0].mxu1 %vm169_vm5, %v142_v39 }
 0x171   :  { %252 = vmatprep.mubr.f32.mxu1 %v986_v10  ;;  %908 = vmatpush3.bf16.msra.mxu1 %v907_v32 }
 0x172   :  { %v864_v40 = vpop.f32.mrb[2].mxu0 }
 0x173   :  { %v152_v41 = vpop.f32.mrb[3].mxu0 }
 0x174   :  { %819 = vmatmul.mubr.msk.f32.gmra.mrb[2].mxu1 %vm169_vm5, %v861_v38 }
 0x175   :  { %258 = vmatprep.mubr.f32.mxu1 %v986_v10 }
 0x178   :  { %820 = vmatmul.mubr.msk.f32.gmra.mrb[4].mxu1 %vm169_vm5, %v152_v41 }
 0x179   :  { %264 = vmatprep.mubr.f32.mxu1 %v986_v10 }
 0x17c   :  { %821 = vmatmul.mubr.msk.f32.gmra.mrb[6].mxu1 %vm169_vm5, %v864_v40 }
 0x17d   :  { %869 = vmatprep.mubr.msk.f32.mxu1 %vm993_vm10, %v986_v10 }
 0x243   :  { %v1046_v43 = vpop.f32.mrb[0].mxu1 }
 0x244   :  { %v250_v44 = vpop.f32.mrb[1].mxu1  ;;  %v278_v45 = vrot.slane %v1046_v43, 1  ;;  %v301_v46 = vrot.slane %v1046_v43, 2  ;;  %v439_v51 = vrot.slane %v1046_v43, 3 }
 0x245   :  { %v585_v47 = vrot.slane %v250_v44, 1  ;;  %v607_v48 = vrot.slane %v250_v44, 2  ;;  %v629_v49 = vrot.slane %v250_v44, 3  ;;  %v652_v52 = vrot.slane %v250_v44, 4 }
 0x247   :  { %v1050_v50 = vpop.f32.mrb[2].mxu1 }
 0x248   :  { %v256_v53 = vpop.f32.mrb[3].mxu1  ;;  %v279_v54 = vrot.slane %v1050_v50, 1  ;;  %v302_v55 = vrot.slane %v1050_v50, 2  ;;  %v440_v56 = vrot.slane %v1050_v50, 3 }
 0x249   :  { %v586_v57 = vrot.slane %v256_v53, 1  ;;  %v608_v58 = vrot.slane %v256_v53, 2  ;;  %v630_v59 = vrot.slane %v256_v53, 3  ;;  %v653_v60 = vrot.slane %v256_v53, 4 }
 0x24a   :  { %286 = vrot.lane.b32.xlu1 %v279_v54, %s988_s30  ;;  %v280_v61 = vsel %vm277_vm6, %v278_v45, %v279_v54  ;;  %v303_v62 = vsel %vm300_vm7, %v301_v46, %v302_v55  ;;  %v441_v63 = vsel %vm438_vm8, %v439_v51, %v440_v56 }
 0x24b   :  { %284 = vrot.lane.b32.xlu0 %v280_v61, %s988_s30  ;;  %v587_v0 = vsel %vm277_vm6, %v585_v47, %v586_v57  ;;  %v1062_v1 = vpop.f32.mrb[4].mxu1  ;;  %v609_v2 = vsel %vm300_vm7, %v607_v48, %v608_v58  ;;  %v631_v3 = vsel %vm438_vm8, %v629_v49, %v630_v59  ;;  %v654_v4 = vsel %vm651_vm9, %v652_v52, %v653_v60 }
 0x24c   :  { %v262_v5 = vpop.f32.mrb[5].mxu1  ;;  %v281_v6 = vrot.slane %v1062_v1, 1  ;;  %v304_v7 = vrot.slane %v1062_v1, 2  ;;  %v442_v8 = vrot.slane %v1062_v1, 3 }
 0x24d   :  { %v588_v9 = vrot.slane %v262_v5, 1  ;;  %v610_v11 = vrot.slane %v262_v5, 2  ;;  %v632_v12 = vrot.slane %v262_v5, 3  ;;  %v655_v13 = vrot.slane %v262_v5, 4 }
 0x24e   :  { %309 = vrot.lane.b32.xlu1 %v302_v55, %s989_s3 }
 0x24f   :  { %307 = vrot.lane.b32.xlu0 %v303_v62, %s989_s3  ;;  %v1072_v14 = vpop.f32.mrb[6].mxu1 }
 0x250   :  { %v268_v15 = vpop.f32.mrb[7].mxu1  ;;  %v282_v16 = vrot.slane %v1072_v14, 1  ;;  %v305_v17 = vrot.slane %v1072_v14, 2  ;;  %v443_v18 = vrot.slane %v1072_v14, 3 }
 0x251   :  { %v589_v19 = vrot.slane %v268_v15, 1  ;;  %v611_v20 = vrot.slane %v268_v15, 2  ;;  %v633_v21 = vrot.slane %v268_v15, 3  ;;  %v656_v22 = vrot.slane %v268_v15, 4 }
 0x252   :  { %447 = vrot.lane.b32.xlu1 %v440_v56, %s990_s4  ;;  %v283_v23 = vsel %vm277_vm6, %v281_v6, %v282_v16  ;;  %v306_v24 = vsel %vm300_vm7, %v304_v7, %v305_v17  ;;  %v444_v25 = vsel %vm438_vm8, %v442_v8, %v443_v18 }
 0x253   :  { %445 = vrot.lane.b32.xlu0 %v441_v63, %s990_s4  ;;  %v590_v26 = vsel %vm277_vm6, %v588_v9, %v589_v19  ;;  %v612_v27 = vsel %vm300_vm7, %v610_v11, %v611_v20  ;;  %v634_v28 = vsel %vm438_vm8, %v632_v12, %v633_v21  ;;  %v657_v29 = vsel %vm651_vm9, %v655_v13, %v656_v22 }
 0x254   :  { %vm363_vm7 = vcmask 1041409   ;;  %vm693_vm8 = vcmask 1048448   ;;  %vm695_vm9 = vcmask 1044352  }
 0x256   :  { %591 = vrot.lane.b32.xlu1 %v587_v0, %s988_s30 }
 0x257   :  { %593 = vrot.lane.b32.xlu0 %v586_v57, %s988_s30 }
 0x25a   :  { %613 = vrot.lane.b32.xlu1 %v609_v2, %s989_s3 }
 0x25b   :  { %615 = vrot.lane.b32.xlu0 %v608_v58, %s989_s3 }
 0x25e   :  { %635 = vrot.lane.b32.xlu1 %v631_v3, %s990_s4 }
 0x25f   :  { %637 = vrot.lane.b32.xlu0 %v630_v59, %s990_s4 }
 0x262   :  { %658 = vrot.lane.b32.xlu1 %v654_v4, %s991_s5 }
 0x263   :  { %660 = vrot.lane.b32.xlu0 %v653_v60, %s991_s5 }
 0x266   :  { %290 = vrot.lane.b32.xlu1 %v282_v16, %s988_s30 }
 0x267   :  { %288 = vrot.lane.b32.xlu0 %v283_v23, %s988_s30 }
 0x26a   :  { %313 = vrot.lane.b32.xlu1 %v305_v17, %s989_s3 }
 0x26b   :  { %311 = vrot.lane.b32.xlu0 %v306_v24, %s989_s3 }
 0x26e   :  { %451 = vrot.lane.b32.xlu1 %v443_v18, %s990_s4 }
 0x26f   :  { %449 = vrot.lane.b32.xlu0 %v444_v25, %s990_s4 }
 0x272   :  { %595 = vrot.lane.b32.xlu1 %v590_v26, %s988_s30 }
 0x273   :  { %597 = vrot.lane.b32.xlu0 %v589_v19, %s988_s30 }
 0x276   :  { %617 = vrot.lane.b32.xlu1 %v612_v27, %s989_s3 }
 0x277   :  { %619 = vrot.lane.b32.xlu0 %v611_v20, %s989_s3 }
 0x27a   :  { %639 = vrot.lane.b32.xlu1 %v634_v28, %s990_s4 }
 0x27b   :  { %641 = vrot.lane.b32.xlu0 %v633_v21, %s990_s4 }
 0x27e   :  { %662 = vrot.lane.b32.xlu1 %v657_v29, %s991_s5 }
 0x27f   :  { %664 = vrot.lane.b32.xlu0 %v656_v22, %s991_s5 }
 0x282   :  { %674 = vrot.lane.b32.xlu1 %v1043_v42, %s990_s4 }
 0x2bc   :  { %v287_v38 = vpop.permute.xlu1 %286 }
 0x2bd   :  { %v285_v39 = vpop.permute.xlu0 %284  ;;  %v297_v40 = vadd.f32 %v287_v38, %v1050_v50 }
 0x2be   :  { %v296_v41 = vadd.f32 %v285_v39, %v1046_v43 }
 0x2c0   :  { %v310_v44 = vpop.permute.xlu1 %309 }
 0x2c1   :  { %v320_v45 = vadd.f32 %v310_v44, %v297_v40  ;;  %v308_v46 = vpop.permute.xlu0 %307 }
 0x2c2   :  { %v319_v47 = vadd.f32 %v308_v46, %v296_v41 }
 0x2c3   :  { %v324_v48 = vadd.f32 %v320_v45, %v1043_v42 }
 0x2c4   :  { %v323_v49 = vadd.f32 %v319_v47, %v1043_v42  ;;  %v448_v51 = vpop.permute.xlu1 %447 }
 0x2c5   :  { %vm328_vm12 = vcmp.gt.f32.partialorder %v324_v48, 0.0  ;;  %v332_v52 = vmul.f32 0.01, %v324_v48  ;;  %v458_v53 = vadd.f32 %v448_v51, %v320_v45  ;;  %v446_v54 = vpop.permute.xlu0 %445 }
 0x2c6   :  { %vm327_vm14 = vcmp.gt.f32.partialorder %v323_v49, 0.0  ;;  %v331_v55 = vmul.f32 0.01, %v323_v49  ;;  %v457_v56 = vadd.f32 %v446_v54, %v319_v47 }
 0x2c7   :  { %v336_v57 = vsel %vm328_vm12, %v324_v48, %v332_v52  ;;  %v466_v58 = vadd.f32 %v1110_v37, %v458_v53 }
 0x2c8   :  { %v342_v59 = vsel %vm341_vm11, %v336_v57, -inf  ;;  %v335_v60 = vsel %vm327_vm14, %v323_v49, %v331_v55  ;;  %v465_v61 = vadd.f32 %v1110_v37, %v457_v56  ;;  %v1119_v62 = vpop.permute.xlu1 %591 }
 0x2c9   :  { %v340_v63 = vsel %vm339_vm13, %v335_v60, -inf  ;;  %vm470_vm0 = vcmp.gt.f32.partialorder %v466_v58, 0.0  ;;  %v474_v0 = vmul.f32 0.01, %v466_v58  ;;  %v1122_v2 = vpop.permute.xlu0 %593 }
 0x2ca   :  { %v343_v3 = vmax.f32 %v340_v63, %v342_v59  ;;  %vm469_vm2 = vcmp.gt.f32.partialorder %v465_v61, 0.0  ;;  %v473_v4 = vmul.f32 0.01, %v465_v61 }
 0x2cb   :  { %v478_v5 = vsel %vm470_vm0, %v466_v58, %v474_v0  ;;  %vm793_vm0 = vcmask 25600  }
 0x2cc   :  { %v484_v6 = vsel %vm483_vm15, %v478_v5, -inf  ;;  %v477_v7 = vsel %vm469_vm2, %v465_v61, %v473_v4  ;;  %v1125_v8 = vpop.permute.xlu1 %613  ;;  %v344_v23 = vrot.slane %v343_v3, 4 }
 0x2cd   :  { %v482_v9 = vsel %vm481_vm1, %v477_v7, -inf  ;;  %v1128_v11 = vpop.permute.xlu0 %615  ;;  %v604_v7 = vadd.f32 %v1122_v2, %v1050_v50 }
 0x2ce   :  { %v485_v12 = vmax.f32 %v482_v9, %v484_v6  ;;  %v345_v30 = vmax.f32 %v343_v3, %v344_v23  ;;  %v603_v6 = vadd.f32 %v1119_v62, %v1046_v43 }
 0x2d0   :  { %v1130_v13 = vpop.permute.xlu1 %635  ;;  %v486_v34 = vrot.slane %v485_v12, 4  ;;  %v625_v23 = vadd.f32 %v1125_v8, %v603_v6 }
 0x2d1   :  { %v1132_v15 = vpop.permute.xlu0 %637 }
 0x2d2   :  { %v487_v52 = vmax.f32 %v485_v12, %v486_v34  ;;  %v647_v50 = vadd.f32 %v1130_v13, %v625_v23  ;;  %v272_v23 = vld [vmem:[#allocation2 + $0x120] ss:$0 sm:$0xff] }
 0x2d4   :  { %v1134_v16 = vpop.permute.xlu1 %658  ;;  %v488_v63 = vrot.slane %v487_v52, 2 }
 0x2d5   :  { %v1136_v17 = vpop.permute.xlu0 %660  ;;  %v670_v8 = vadd.f32 %v1134_v16, %v647_v50 }
 0x2d8   :  { %v291_v18 = vpop.permute.xlu1 %290 }
 0x2d9   :  { %v289_v19 = vpop.permute.xlu0 %288  ;;  %v299_v20 = vadd.f32 %v291_v18, %v1072_v14 }
 0x2da   :  { %v298_v21 = vadd.f32 %v289_v19, %v1062_v1 }
 0x2dc   :  { %v314_v22 = vpop.permute.xlu1 %313 }
 0x2dd   :  { %v322_v24 = vadd.f32 %v314_v22, %v299_v20  ;;  %v312_v25 = vpop.permute.xlu0 %311 }
 0x2de   :  { %v321_v26 = vadd.f32 %v312_v25, %v298_v21  ;;  %v489_v21 = vmax.f32 %v487_v52, %v488_v63 }
 0x2df   :  { %v326_v27 = vadd.f32 %v322_v24, %v1043_v42 }
 0x2e0   :  { %v325_v28 = vadd.f32 %v321_v26, %v1043_v42  ;;  %v452_v29 = vpop.permute.xlu1 %451  ;;  %v346_v42 = vrot.slane %v345_v30, 2 }
 0x2e1   :  { %vm330_vm3 = vcmp.gt.f32.partialorder %v326_v27, 0.0  ;;  %v334_v31 = vmul.f32 0.01, %v326_v27  ;;  %v460_v32 = vadd.f32 %v452_v29, %v322_v24  ;;  %v450_v33 = vpop.permute.xlu0 %449  ;;  %v626_v24 = vadd.f32 %v1128_v11, %v604_v7 }
 0x2e2   :  { %vm329_vm4 = vcmp.gt.f32.partialorder %v325_v28, 0.0  ;;  %v333_v35 = vmul.f32 0.01, %v325_v28  ;;  %v459_v36 = vadd.f32 %v450_v33, %v321_v26  ;;  %v347_v58 = vmax.f32 %v345_v30, %v346_v42 }
 0x2e3   :  { %v338_v38 = vsel %vm330_vm3, %v326_v27, %v334_v31  ;;  %v468_v39 = vadd.f32 %v1110_v37, %v460_v32  ;;  %v490_v31 = vrot.slane %v489_v21, 1 }
 0x2e4   :  { %v351_v40 = vsel %vm341_vm11, %v338_v38, -inf  ;;  %v337_v41 = vsel %vm329_vm4, %v325_v28, %v333_v35  ;;  %v467_v44 = vadd.f32 %v1110_v37, %v459_v36  ;;  %v596_v45 = vpop.permute.xlu1 %595  ;;  %v348_v18 = vrot.slane %v347_v58, 1 }
 0x2e5   :  { %v350_v46 = vsel %vm339_vm13, %v337_v41, -inf  ;;  %vm472_vm5 = vcmp.gt.f32.partialorder %v468_v39, 0.0  ;;  %v476_v47 = vmul.f32 0.01, %v468_v39  ;;  %v598_v48 = vpop.permute.xlu0 %597  ;;  %v605_v9 = vadd.f32 %v596_v45, %v1062_v1 }
 0x2e6   :  { %v352_v49 = vmax.f32 %v350_v46, %v351_v40  ;;  %vm471_vm6 = vcmp.gt.f32.partialorder %v467_v44, 0.0  ;;  %v475_v51 = vmul.f32 0.01, %v467_v44  ;;  %v606_v4 = vadd.f32 %v598_v48, %v1072_v14 }
 0x2e7   :  { %v480_v53 = vsel %vm472_vm5, %v468_v39, %v476_v47  ;;  %v648_v1 = vadd.f32 %v1132_v15, %v626_v24  ;;  %v349_v28 = vmax.f32 %v347_v58, %v348_v18  ;;  %v491_v40 = vmax.f32 %v489_v21, %v490_v31 }
 0x2e8   :  { %v353_v54 = vrot.slane %v352_v49, 4  ;;  %v493_v55 = vsel %vm483_vm15, %v480_v53, -inf  ;;  %v479_v56 = vsel %vm471_vm6, %v467_v44, %v475_v51  ;;  %v618_v57 = vpop.permute.xlu1 %617 }
 0x2e9   :  { %v492_v37 = vsel %vm481_vm1, %v479_v56, -inf  ;;  %v620_v59 = vpop.permute.xlu0 %619  ;;  %v627_v14 = vadd.f32 %v618_v57, %v605_v9  ;;  %v671_v11 = vadd.f32 %v1136_v17, %v648_v1  ;;  %v713_v9 = vld [vmem:[#allocation2 + $0x100] sm:$0xff] }
 0x2ea   :  { %v354_v60 = vmax.f32 %v352_v49, %v353_v54  ;;  %v494_v61 = vmax.f32 %v492_v37, %v493_v55  ;;  %v628_v20 = vadd.f32 %v620_v59, %v606_v4 }
 0x2ec   :  { %v355_v0 = vrot.slane %v354_v60, 2  ;;  %v495_v3 = vrot.slane %v494_v61, 4  ;;  %v640_v5 = vpop.permute.xlu1 %639 }
 0x2ed   :  { %v642_v12 = vpop.permute.xlu0 %641  ;;  %v649_v62 = vadd.f32 %v640_v5, %v627_v14 }
 0x2ee   :  { %v356_v19 = vmax.f32 %v354_v60, %v355_v0  ;;  %v496_v22 = vmax.f32 %v494_v61, %v495_v3  ;;  %v650_v25 = vadd.f32 %v642_v12, %v628_v20  ;;  %v714_v12 = vld [vmem:[#allocation2 + $0x110] sm:$0xff] }
 0x2ef   :  { %v913_v18 = vpack.c.bf16 %v714_v12, %v713_v9 }
 0x2f0   :  { %v663_v26 = vpop.permute.xlu1 %662  ;;  %v357_v27 = vrot.slane %v356_v19, 1  ;;  %v497_v43 = vrot.slane %v496_v22, 2 }
 0x2f1   :  { %v665_v2 = vpop.permute.xlu0 %664  ;;  %v672_v33 = vadd.f32 %v663_v26, %v649_v62 }
 0x2f2   :  { %v673_v29 = vadd.f32 %v665_v2, %v650_v25  ;;  %v358_v30 = vmax.f32 %v356_v19, %v357_v27  ;;  %v498_v32 = vmax.f32 %v496_v22, %v497_v43 }
 0x2f4   :  { %v675_v34 = vpop.permute.xlu1 %674  ;;  %v364_v35 = vsel %vm363_vm7, %v358_v30, %v349_v28  ;;  %v499_v36 = vrot.slane %v498_v32, 1 }
 0x2f5   :  { %v677_v38 = vadd.f32 %v675_v34, %v670_v8  ;;  %v678_v13 = vadd.f32 %v675_v34, %v671_v11  ;;  %v679_v39 = vadd.f32 %v675_v34, %v672_v33  ;;  %v680_v15 = vadd.f32 %v675_v34, %v673_v29  ;;  %870 = vmatmul.mubr.msk.f32.vlgmr.msra.gmra.mrb[8].mxu1 %vm339_vm13, %v364_v35 }
 0x2f6   :  { %v500_v41 = vmax.f32 %v498_v32, %v499_v36 }
 0x2f7   :  { %vm681_vm11 = vcmp.gt.f32.partialorder %v677_v38, 0.0  ;;  %vm682_vm12 = vcmp.gt.f32.partialorder %v678_v13, 0.0  ;;  %vm683_vm14 = vcmp.gt.f32.partialorder %v679_v39, 0.0  ;;  %vm684_vm15 = vcmp.gt.f32.partialorder %v680_v15, 0.0 }
 0x2f8   :  { %v685_v16 = vmul.f32 0.01, %v677_v38  ;;  %v686_v17 = vmul.f32 0.01, %v678_v13  ;;  %v687_v44 = vmul.f32 0.01, %v679_v39  ;;  %v505_v45 = vsel %vm363_vm7, %v500_v41, %v491_v40 }
 0x2f9   :  { %v688_v42 = vmul.f32 0.01, %v680_v15  ;;  %506 = vrot.lane.b32.xlu0 %v505_v45, %s990_s4 }
 0x2fa   :  { %v689_v46 = vsel %vm681_vm11, %v677_v38, %v685_v16  ;;  %v690_v47 = vsel %vm682_vm12, %v678_v13, %v686_v17  ;;  %v691_v48 = vsel %vm683_vm14, %v679_v39, %v687_v44 }
 0x2fb   :  { %v692_v49 = vsel %vm684_vm15, %v680_v15, %v688_v42  ;;  %v694_v51 = vsel %vm693_vm8, %v689_v46, -inf  ;;  %v696_v52 = vsel %vm695_vm9, %v690_v47, -inf  ;;  %v704_v53 = vsel %vm693_vm8, %v691_v48, -inf }
 0x2fc   :  { %v705_v54 = vsel %vm695_vm9, %v692_v49, -inf  ;;  %v697_v55 = vmax.f32 %v694_v51, %v696_v52 }
 0x2fd   :  { %v706_v56 = vmax.f32 %v704_v53, %v705_v54 }
 0x2fe   :  { %v698_v57 = vrot.slane %v697_v55, 4 }
 0x2ff   :  { %v707_v58 = vrot.slane %v706_v56, 4 }
 0x300   :  { %v699_v37 = vmax.f32 %v697_v55, %v698_v57 }
 0x301   :  { %v708_v59 = vmax.f32 %v706_v56, %v707_v58 }
 0x302   :  { %v700_v60 = vrot.slane %v699_v37, 2 }
 0x303   :  { %v709_v61 = vrot.slane %v708_v59, 2 }
 0x304   :  { %v701_v63 = vmax.f32 %v699_v37, %v700_v60 }
 0x305   :  { %v710_v0 = vmax.f32 %v708_v59, %v709_v61 }
 0x306   :  { %v702_v3 = vrot.slane %v701_v63, 1 }
 0x307   :  { %v711_v4 = vrot.slane %v710_v0, 1 }
 0x308   :  { %v703_v5 = vmax.f32 %v701_v63, %v702_v3 }
 0x309   :  { %v712_v6 = vmax.f32 %v710_v0, %v711_v4 }
 0x30b   :  { %v717_v7 = vsel %vm363_vm7, %v712_v6, %v703_v5 }
 0x30c   :  { %718 = vrot.lane.b32.xlu1 %v717_v7, %s984_s20 }
 0x36b   :  { %v507_v19 = vpop.permute.xlu0 %506 }
 0x36c   :  { %877 = vmatmul.mubr.msk.f32.vlgmr.msra.gmra.mrb[4].mxu0 %vm339_vm13, %v507_v19 }
 0x36d   :  { %914 = vmatpush3.bf16.msra.mxu0 %v913_v18  ;;  %883 = vmatprep.mubr.msk.f32.mxu0 %vm993_vm10, %v986_v10 }
 0x37e   :  { %v719_v20 = vpop.permute.xlu1 %718 }
 0x37f   :  { %884 = vmatmul.mubr.msk.f32.vlgmr.msra.gmra.mrb[4].mxu0 %vm339_vm13, %v719_v20 }
 0x3c8   :  { %v433_v21 = vpop.f32.mrb[8].mxu1 }
 0x3c9   :  { %v871_v22 = vpop.f32.mrb[9].mxu1  ;;  %v437_v24 = vadd.f32 %v433_v21, %v272_v23 }
 0x452   :  { %v788_v14 = vpop.f32.mrb[4].mxu0 }
 0x453   :  { %v916_v25 = vadd.f32 %v788_v14, %v437_v24  ;;  %v885_v26 = vpop.f32.mrb[5].mxu0 }
 0x455   :  { %794 = vst.msk [vmem:[#allocation5] sm:$0x3] %vm793_vm0, %v916_v25 }
 0x456   :  { %967 = shalt.err (!%p964_p12)
}
 0x457   :  { %s968_s11 = scalar_lea.hbm %s1188_s2, 32 }
 0x458   :  { %p969_p13 = scmp.ne.s32.totalorder %s1188_s2, %s968_s11  ;;  %p972_p0 = scmp.lt.u32.totalorder %s968_s11, %s1188_s2 }
 0x45a   :  { %p974_p1 = pnand %p972_p0, %p969_p13 }
 0x45c   :  { %977 = shalt.err (!%p974_p1)
}
 0x45d   :  { %804 = dma.vmem_to_hbm [thread:$0]  %s802_s7, 32, %s1188_s2, [#allocation4]  }
 0x45e   :  { %980 = dma.done.wait [#allocation4], 32  }
 0x45f   :  { %981 = vsyncadd [#allocation4], 4294967264 }
 0x460   :  { %808 = vsyncpa [#allocation3], 1 }
 0x461   :  { %809 = vsyncpa [#allocation4], 1 }

</bundles_post_ra>
